<compile_context>
chip_gen: v7x
topology: tpu7x:2x2x1
jax: 0.10.0
libtpu: 0.0.40
codegen_flags: <defaults>
</compile_context>

<pallas_src>
import math
from functools import partial

import jax
import jax.numpy as jnp
from jax.experimental import pallas as pl
from jax.experimental.pallas import tpu as pltpu


# ----------------------------- fused multi-layer kernel -----------------------------
def _mlcag_kernel(
    eeg_ref,      # (Bp, D)      f32
    et_ref,       # (Bp, Ep)     f32   (et columns zero-padded to Ep)
    w_et_ref,     # (Ep, D)      bf16  (rows E..Ep are zero)
    wv_ref,       # (D, L*D)     bf16  (L V-projection weights packed along lanes)
    wf1_ref,      # (2D, D)      bf16  (fusion layer-1; rows 0:D act on res, D:2D on gated)
    w_gf2_ref,    # (2, D, D)    bf16  ([0] = gate_et weight, [1] = fusion layer-2 weight)
    bias_ref,     # (NB, D)      f32   (row 0=b_et, 1=b_gate, 2=b_f1, 3=b_f2, 4+l=bv[l])
    out_ref,      # (L, Bp, D)   f32
):
    f32 = jnp.float32
    bf16 = jnp.bfloat16
    L, Bp, D = out_ref.shape

    eeg = eeg_ref[...]                                           # (Bp, D) f32

    # ---- shared weights / biases: loaded once, above all unrolled loops ----
    wg = w_gf2_ref[0]                                            # (D, D) bf16
    wf2 = w_gf2_ref[1]                                           # (D, D) bf16
    wf1_top = wf1_ref[0:D, :]                                    # (D, D) bf16 (tile-aligned)
    wf1_bot = wf1_ref[D:2 * D, :]                                # (D, D) bf16 (tile-aligned)
    biases = bias_ref[...]                                       # (NB, D) f32
    b_et = biases[0:1, :]
    b_g = biases[1:2, :]
    b_f1 = biases[2:3, :]
    b_f2 = biases[3:4, :]

    # ---- et_transformed = linear_et(et_input), computed once ----
    et_t = (
        jnp.dot(et_ref[...].astype(bf16), w_et_ref[...], preferred_element_type=f32)
        + b_et
    )
    et_bf = et_t.astype(bf16)                                    # reused by every layer

    # ---- loop-invariant (res-independent) work, hoisted off the serial chain ----
    # With kv-seq-len 1, cross_attended == V exactly; all L V projections are one
    # wide (Bp, L*D) matmul (better MXU fill on v6e/v7x, amortized push/drain).
    v_all = jnp.dot(et_bf, wv_ref[...], preferred_element_type=f32)   # (Bp, L*D)

    pre = []                                                     # gated_l @ wf1_bot + b_f1
    for l in range(L):                                           # static, fully unrolled
        v = v_all[:, l * D:(l + 1) * D] + biases[4 + l:5 + l, :]
        gate = jax.nn.sigmoid(
            jnp.dot(v.astype(bf16), wg, preferred_element_type=f32) + b_g
        )
        gated = (v * gate).astype(bf16)                          # f32 elementwise, bf16 for MXU
        pre.append(jnp.dot(gated, wf1_bot, preferred_element_type=f32) + b_f1)

    # ---- serial residual chain: only 2 dependent matmuls per layer ----
    res = eeg                                                    # residual_output = eeg_transformed
    for l in range(L):                                           # static, fully unrolled
        h = jnp.maximum(
            jnp.dot(res.astype(bf16), wf1_top, preferred_element_type=f32) + pre[l],
            0.0,
        )
        fused = jnp.dot(h.astype(bf16), wf2, preferred_element_type=f32) + b_f2
        res = eeg + fused                                        # eeg_transformed + fused_output
        out_ref[l] = res                                         # intermediate_outputs[l]


# ------------------------- one-time parameter packing -------------------------
def prepare_params(params):
    """Pack/cast all weights once (bf16 casts, bias slab, V packing, E padding).

    Call this outside the hot path; pass the returned pytree to every forward call.
    """
    bf16 = jnp.bfloat16
    E, D = params["w_et"].shape
    L = params["wv"].shape[0]
    Ep = ((E + 127) // 128) * 128                                # lane-dense K for linear_et

    w_et = jnp.zeros((Ep, D), bf16).at[:E].set(params["w_et"].astype(bf16))
    # (L, D, D) -> (D, L*D): columns [l*D:(l+1)*D] of the packed slab are wv[l]
    wv_pack = jnp.transpose(params["wv"], (1, 0, 2)).reshape(D, L * D).astype(bf16)
    wf1 = params["w_f1"].astype(bf16)                            # (2D, D)
    w_gf2 = jnp.stack([params["w_gate"], params["w_f2"]]).astype(bf16)   # (2, D, D)

    nb = 4 + L
    nbp = max(8, ((nb + 7) // 8) * 8)
    biases = jnp.zeros((nbp, D), jnp.float32)
    biases = biases.at[0].set(params["b_et"].astype(jnp.float32))
    biases = biases.at[1].set(params["b_gate"].astype(jnp.float32))
    biases = biases.at[2].set(params["b_f1"].astype(jnp.float32))
    biases = biases.at[3].set(params["b_f2"].astype(jnp.float32))
    biases = biases.at[4:4 + L].set(params["bv"].astype(jnp.float32))

    return dict(w_et=w_et, wv=wv_pack, wf1=wf1, w_gf2=w_gf2, biases=biases)


# --------------------------------- hot path -----------------------------------
@jax.jit
def _mlcag_jit(eeg_input, et_input, packed):
    B, D = eeg_input.shape
    E = et_input.shape[1]
    Ep = packed["w_et"].shape[0]
    L = packed["wv"].shape[1] // D
    NB = packed["biases"].shape[0]
    Bp = max(8, ((B + 7) // 8) * 8)                              # full f32 sublane

    eeg_p = jnp.zeros((Bp, D), jnp.float32).at[:B].set(eeg_input.astype(jnp.float32))
    et_p = jnp.zeros((Bp, Ep), jnp.float32).at[:B, :E].set(et_input.astype(jnp.float32))

    c2 = lambda i: (0, 0)
    c3 = lambda i: (0, 0, 0)

    out = pl.pallas_call(
        _mlcag_kernel,
        out_shape=jax.ShapeDtypeStruct((L, Bp, D), jnp.float32),
        grid=(1,),
        in_specs=[
            pl.BlockSpec((Bp, D), c2),         # eeg_input (f32)
            pl.BlockSpec((Bp, Ep), c2),        # et_input, lane-padded (f32)
            pl.BlockSpec((Ep, D), c2),         # linear_et weight (bf16)
            pl.BlockSpec((D, L * D), c2),      # packed V weights (bf16)
            pl.BlockSpec((2 * D, D), c2),      # fusion_mlp[0] weight (bf16)
            pl.BlockSpec((2, D, D), c3),       # [gate_et, fusion_mlp[2]] weights (bf16)
            pl.BlockSpec((NB, D), c2),         # all biases, one slab (f32)
        ],
        out_specs=pl.BlockSpec((L, Bp, D), c3),
        compiler_params=pltpu.CompilerParams(dimension_semantics=("arbitrary",)),
    )(eeg_p, et_p, packed["w_et"], packed["wv"], packed["wf1"],
      packed["w_gf2"], packed["biases"])

    return out[:, :B, :]


def ml_cross_attention_gating(eeg_input, et_input, packed):
    out = _mlcag_jit(eeg_input, et_input, packed)
    return [out[i] for i in range(out.shape[0])]


# ------------------------------ pure-JAX reference ----------------------------
# Faithful to the PyTorch forward (keeps the Q/K/softmax path, f32 weights).
def reference(eeg_input, et_input, params):
    D = eeg_input.shape[1]
    L = params["wq"].shape[0]
    et_t = et_input @ params["w_et"] + params["b_et"]
    eeg_t = eeg_input
    res = eeg_t
    outs = []
    for l in range(L):
        xq = res[:, None, :]
        xkv = et_t[:, None, :]
        Q = xq @ params["wq"][l] + params["bq"][l]
        K = xkv @ params["wk"][l] + params["bk"][l]
        V = xkv @ params["wv"][l] + params["bv"][l]
        scores = Q @ jnp.swapaxes(K, -2, -1) / math.sqrt(D)
        w = jax.nn.softmax(scores, axis=-1)
        ca = (w @ V)[:, 0, :]
        gate = jax.nn.sigmoid(ca @ params["w_gate"] + params["b_gate"])
        gated = ca * gate
        combined = jnp.concatenate([res, gated], axis=1)
        h = jnp.maximum(combined @ params["w_f1"] + params["b_f1"], 0.0)
        fused = h @ params["w_f2"] + params["b_f2"]
        res = eeg_t + fused
        outs.append(res)
    return outs


# ------------------------------- deterministic init ---------------------------
def init_params(key, et_dim, d_model, num_layers):
    keys = iter(jax.random.split(key, 64))

    def lin(fan_in, fan_out):
        bound = 1.0 / math.sqrt(fan_in)
        w = jax.random.uniform(next(keys), (fan_in, fan_out), jnp.float32, -bound, bound)
        b = jax.random.uniform(next(keys), (fan_out,), jnp.float32, -bound, bound)
        return w, b

    w_et, b_et = lin(et_dim, d_model)
    w_gate, b_gate = lin(d_model, d_model)  # gate_et
    wqs, bqs, wks, bks, wvs, bvs = [], [], [], [], [], []
    for _ in range(num_layers):
        wq, bq = lin(d_model, d_model)
        wk, bk = lin(d_model, d_model)
        wv, bv = lin(d_model, d_model)
        wqs.append(wq); bqs.append(bq)
        wks.append(wk); bks.append(bk)
        wvs.append(wv); bvs.append(bv)
    w_f1, b_f1 = lin(2 * d_model, d_model)
    w_f2, b_f2 = lin(d_model, d_model)
    return dict(
        w_et=w_et, b_et=b_et,
        wq=jnp.stack(wqs), bq=jnp.stack(bqs),     # kept only for the reference
        wk=jnp.stack(wks), bk=jnp.stack(bks),     # (Q/K are provably dead in forward)
        wv=jnp.stack(wvs), bv=jnp.stack(bvs),
        w_gate=w_gate, b_gate=b_gate,
        w_f1=w_f1, b_f1=b_f1, w_f2=w_f2, b_f2=b_f2,
    )


if __name__ == "__main__":
    B, eeg_dim, et_dim, d_model, num_layers = 4, 128, 96, 128, 3
    assert eeg_dim == d_model  # forward() feeds eeg_input directly into the d_model path

    key = jax.random.PRNGKey(0)
    k_eeg, k_et, k_par = jax.random.split(key, 3)
    eeg = jax.random.normal(k_eeg, (B, eeg_dim), jnp.float32)
    et = jax.random.normal(k_et, (B, et_dim), jnp.float32)
    params = init_params(k_par, et_dim, d_model, num_layers)

    packed = prepare_params(params)            # one-time packing, outside the hot path
    packed = jax.block_until_ready(packed)

    outs = ml_cross_attention_gating(eeg, et, packed)
    outs = jax.block_until_ready(outs)

    refs = reference(eeg, et, params)
    for o, r in zip(outs, refs):
        err = float(jnp.max(jnp.abs(o - r)))
        # kernel uses bf16 matmul operands (f32 accumulate); tolerance reflects that
        assert jnp.allclose(o, r, atol=5e-2, rtol=5e-2), f"mismatch, max abs err={err}"

    print("KERNEL_OK")
</pallas_src>

<mosaic_0001>
module attributes {stable_mosaic.version = 11 : i64} {
  func.func @_mlcag_kernel(%arg0: i32, %arg1: memref<8x128xf32, #tpu.memory_space<vmem>>, %arg2: memref<8x128xf32, #tpu.memory_space<vmem>>, %arg3: memref<128x128xbf16, #tpu.memory_space<vmem>>, %arg4: memref<128x384xbf16, #tpu.memory_space<vmem>>, %arg5: memref<256x128xbf16, #tpu.memory_space<vmem>>, %arg6: memref<2x128x128xbf16, #tpu.memory_space<vmem>>, %arg7: memref<8x128xf32, #tpu.memory_space<vmem>>, %arg8: memref<3x8x128xf32, #tpu.memory_space<vmem>>) attributes {dimension_semantics = [#tpu.dimension_semantics<arbitrary>], iteration_bounds = array<i64: 1>, scalar_prefetch = 0 : i64, scratch_operands = 0 : i64, tpu.core_type = #tpu.core_type<tc>, window_params = [{pipeline_mode = #tpu.pipeline_mode<synchronous>, transform_indices = @transform_0, window_bounds = array<i64: 8, 128>}, {pipeline_mode = #tpu.pipeline_mode<synchronous>, transform_indices = @transform_1, window_bounds = array<i64: 8, 128>}, {pipeline_mode = #tpu.pipeline_mode<synchronous>, transform_indices = @transform_2, window_bounds = array<i64: 128, 128>}, {pipeline_mode = #tpu.pipeline_mode<synchronous>, transform_indices = @transform_3, window_bounds = array<i64: 128, 384>}, {pipeline_mode = #tpu.pipeline_mode<synchronous>, transform_indices = @transform_4, window_bounds = array<i64: 256, 128>}, {pipeline_mode = #tpu.pipeline_mode<synchronous>, transform_indices = @transform_5, window_bounds = array<i64: 2, 128, 128>}, {pipeline_mode = #tpu.pipeline_mode<synchronous>, transform_indices = @transform_6, window_bounds = array<i64: 8, 128>}, {pipeline_mode = #tpu.pipeline_mode<synchronous>, transform_indices = @transform_7, window_bounds = array<i64: 3, 8, 128>}]} {
    %c0 = arith.constant 0 : index
    %c0_0 = arith.constant 0 : index
    %0 = vector.load %arg1[%c0, %c0_0] : memref<8x128xf32, #tpu.memory_space<vmem>>, vector<8x128xf32>
    %c0_1 = arith.constant 0 : index
    %c0_2 = arith.constant 0 : index
    %c0_3 = arith.constant 0 : index
    %1 = vector.load %arg6[%c0_1, %c0_2, %c0_3] : memref<2x128x128xbf16, #tpu.memory_space<vmem>>, vector<1x128x128xbf16>
    %2 = vector.shape_cast %1 : vector<1x128x128xbf16> to vector<128x128xbf16>
    %c1 = arith.constant 1 : index
    %c0_4 = arith.constant 0 : index
    %c0_5 = arith.constant 0 : index
    %3 = vector.load %arg6[%c1, %c0_4, %c0_5] : memref<2x128x128xbf16, #tpu.memory_space<vmem>>, vector<1x128x128xbf16>
    %4 = vector.shape_cast %3 : vector<1x128x128xbf16> to vector<128x128xbf16>
    %c0_6 = arith.constant 0 : index
    %c0_7 = arith.constant 0 : index
    %5 = vector.load %arg5[%c0_6, %c0_7] : memref<256x128xbf16, #tpu.memory_space<vmem>>, vector<128x128xbf16>
    %c128 = arith.constant 128 : index
    %c0_8 = arith.constant 0 : index
    %6 = vector.load %arg5[%c128, %c0_8] : memref<256x128xbf16, #tpu.memory_space<vmem>>, vector<128x128xbf16>
    %c0_9 = arith.constant 0 : index
    %c0_10 = arith.constant 0 : index
    %7 = vector.load %arg7[%c0_9, %c0_10] : memref<8x128xf32, #tpu.memory_space<vmem>>, vector<8x128xf32>
    %8 = vector.extract_strided_slice %7 {offsets = [0, 0], sizes = [1, 128], strides = [1, 1]} : vector<8x128xf32> to vector<1x128xf32>
    %9 = vector.extract_strided_slice %7 {offsets = [1, 0], sizes = [1, 128], strides = [1, 1]} : vector<8x128xf32> to vector<1x128xf32>
    %10 = vector.extract_strided_slice %7 {offsets = [2, 0], sizes = [1, 128], strides = [1, 1]} : vector<8x128xf32> to vector<1x128xf32>
    %11 = vector.extract_strided_slice %7 {offsets = [3, 0], sizes = [1, 128], strides = [1, 1]} : vector<8x128xf32> to vector<1x128xf32>
    %c0_11 = arith.constant 0 : index
    %c0_12 = arith.constant 0 : index
    %12 = vector.load %arg2[%c0_11, %c0_12] : memref<8x128xf32, #tpu.memory_space<vmem>>, vector<8x128xf32>
    %13 = arith.truncf %12 : vector<8x128xf32> to vector<8x128xbf16>
    %c0_13 = arith.constant 0 : index
    %c0_14 = arith.constant 0 : index
    %14 = vector.load %arg3[%c0_13, %c0_14] : memref<128x128xbf16, #tpu.memory_space<vmem>>, vector<128x128xbf16>
    %cst = arith.constant dense<0.000000e+00> : vector<8x128xf32>
    %15 = tpu.matmul %13, %14, %cst {dimension_numbers = #tpu.dot_dimension_numbers<[1], [0], [0], [1], [0, 0, 1, 1], [], []>} : vector<8x128xbf16>, vector<128x128xbf16>, vector<8x128xf32> -> vector<8x128xf32>
    %16 = vector.broadcast %8 : vector<1x128xf32> to vector<8x128xf32>
    %17 = arith.addf %15, %16 : vector<8x128xf32>
    %18 = arith.truncf %17 : vector<8x128xf32> to vector<8x128xbf16>
    %c0_15 = arith.constant 0 : index
    %c0_16 = arith.constant 0 : index
    %19 = vector.load %arg4[%c0_15, %c0_16] : memref<128x384xbf16, #tpu.memory_space<vmem>>, vector<128x384xbf16>
    %cst_17 = arith.constant dense<0.000000e+00> : vector<8x384xf32>
    %20 = tpu.matmul %18, %19, %cst_17 {dimension_numbers = #tpu.dot_dimension_numbers<[1], [0], [0], [1], [0, 0, 1, 1], [], []>} : vector<8x128xbf16>, vector<128x384xbf16>, vector<8x384xf32> -> vector<8x384xf32>
    %21 = vector.extract_strided_slice %20 {offsets = [0, 0], sizes = [8, 128], strides = [1, 1]} : vector<8x384xf32> to vector<8x128xf32>
    %22 = vector.extract_strided_slice %7 {offsets = [4, 0], sizes = [1, 128], strides = [1, 1]} : vector<8x128xf32> to vector<1x128xf32>
    %23 = vector.broadcast %22 : vector<1x128xf32> to vector<8x128xf32>
    %24 = arith.addf %21, %23 : vector<8x128xf32>
    %25 = arith.truncf %24 : vector<8x128xf32> to vector<8x128xbf16>
    %cst_18 = arith.constant dense<0.000000e+00> : vector<8x128xf32>
    %26 = tpu.matmul %25, %2, %cst_18 {dimension_numbers = #tpu.dot_dimension_numbers<[1], [0], [0], [1], [0, 0, 1, 1], [], []>} : vector<8x128xbf16>, vector<128x128xbf16>, vector<8x128xf32> -> vector<8x128xf32>
    %27 = vector.broadcast %9 : vector<1x128xf32> to vector<8x128xf32>
    %28 = arith.addf %26, %27 : vector<8x128xf32>
    %29 = arith.negf %28 : vector<8x128xf32>
    %30 = math.exp %29 : vector<8x128xf32>
    %cst_19 = arith.constant 1.000000e+00 : f32
    %31 = vector.broadcast %cst_19 : f32 to vector<8x128xf32>
    %32 = arith.addf %31, %30 : vector<8x128xf32>
    %33 = arith.divf %31, %32 : vector<8x128xf32>
    %34 = arith.mulf %24, %33 : vector<8x128xf32>
    %35 = arith.truncf %34 : vector<8x128xf32> to vector<8x128xbf16>
    %cst_20 = arith.constant dense<0.000000e+00> : vector<8x128xf32>
    %36 = tpu.matmul %35, %6, %cst_20 {dimension_numbers = #tpu.dot_dimension_numbers<[1], [0], [0], [1], [0, 0, 1, 1], [], []>} : vector<8x128xbf16>, vector<128x128xbf16>, vector<8x128xf32> -> vector<8x128xf32>
    %37 = vector.broadcast %10 : vector<1x128xf32> to vector<8x128xf32>
    %38 = arith.addf %36, %37 : vector<8x128xf32>
    %39 = vector.extract_strided_slice %20 {offsets = [0, 128], sizes = [8, 128], strides = [1, 1]} : vector<8x384xf32> to vector<8x128xf32>
    %40 = vector.extract_strided_slice %7 {offsets = [5, 0], sizes = [1, 128], strides = [1, 1]} : vector<8x128xf32> to vector<1x128xf32>
    %41 = vector.broadcast %40 : vector<1x128xf32> to vector<8x128xf32>
    %42 = arith.addf %39, %41 : vector<8x128xf32>
    %43 = arith.truncf %42 : vector<8x128xf32> to vector<8x128xbf16>
    %cst_21 = arith.constant dense<0.000000e+00> : vector<8x128xf32>
    %44 = tpu.matmul %43, %2, %cst_21 {dimension_numbers = #tpu.dot_dimension_numbers<[1], [0], [0], [1], [0, 0, 1, 1], [], []>} : vector<8x128xbf16>, vector<128x128xbf16>, vector<8x128xf32> -> vector<8x128xf32>
    %45 = vector.broadcast %9 : vector<1x128xf32> to vector<8x128xf32>
    %46 = arith.addf %44, %45 : vector<8x128xf32>
    %47 = arith.negf %46 : vector<8x128xf32>
    %48 = math.exp %47 : vector<8x128xf32>
    %cst_22 = arith.constant 1.000000e+00 : f32
    %49 = vector.broadcast %cst_22 : f32 to vector<8x128xf32>
    %50 = arith.addf %49, %48 : vector<8x128xf32>
    %51 = arith.divf %49, %50 : vector<8x128xf32>
    %52 = arith.mulf %42, %51 : vector<8x128xf32>
    %53 = arith.truncf %52 : vector<8x128xf32> to vector<8x128xbf16>
    %cst_23 = arith.constant dense<0.000000e+00> : vector<8x128xf32>
    %54 = tpu.matmul %53, %6, %cst_23 {dimension_numbers = #tpu.dot_dimension_numbers<[1], [0], [0], [1], [0, 0, 1, 1], [], []>} : vector<8x128xbf16>, vector<128x128xbf16>, vector<8x128xf32> -> vector<8x128xf32>
    %55 = vector.broadcast %10 : vector<1x128xf32> to vector<8x128xf32>
    %56 = arith.addf %54, %55 : vector<8x128xf32>
    %57 = vector.extract_strided_slice %20 {offsets = [0, 256], sizes = [8, 128], strides = [1, 1]} : vector<8x384xf32> to vector<8x128xf32>
    %58 = vector.extract_strided_slice %7 {offsets = [6, 0], sizes = [1, 128], strides = [1, 1]} : vector<8x128xf32> to vector<1x128xf32>
    %59 = vector.broadcast %58 : vector<1x128xf32> to vector<8x128xf32>
    %60 = arith.addf %57, %59 : vector<8x128xf32>
    %61 = arith.truncf %60 : vector<8x128xf32> to vector<8x128xbf16>
    %cst_24 = arith.constant dense<0.000000e+00> : vector<8x128xf32>
    %62 = tpu.matmul %61, %2, %cst_24 {dimension_numbers = #tpu.dot_dimension_numbers<[1], [0], [0], [1], [0, 0, 1, 1], [], []>} : vector<8x128xbf16>, vector<128x128xbf16>, vector<8x128xf32> -> vector<8x128xf32>
    %63 = vector.broadcast %9 : vector<1x128xf32> to vector<8x128xf32>
    %64 = arith.addf %62, %63 : vector<8x128xf32>
    %65 = arith.negf %64 : vector<8x128xf32>
    %66 = math.exp %65 : vector<8x128xf32>
    %cst_25 = arith.constant 1.000000e+00 : f32
    %67 = vector.broadcast %cst_25 : f32 to vector<8x128xf32>
    %68 = arith.addf %67, %66 : vector<8x128xf32>
    %69 = arith.divf %67, %68 : vector<8x128xf32>
    %70 = arith.mulf %60, %69 : vector<8x128xf32>
    %71 = arith.truncf %70 : vector<8x128xf32> to vector<8x128xbf16>
    %cst_26 = arith.constant dense<0.000000e+00> : vector<8x128xf32>
    %72 = tpu.matmul %71, %6, %cst_26 {dimension_numbers = #tpu.dot_dimension_numbers<[1], [0], [0], [1], [0, 0, 1, 1], [], []>} : vector<8x128xbf16>, vector<128x128xbf16>, vector<8x128xf32> -> vector<8x128xf32>
    %73 = vector.broadcast %10 : vector<1x128xf32> to vector<8x128xf32>
    %74 = arith.addf %72, %73 : vector<8x128xf32>
    %75 = arith.truncf %0 : vector<8x128xf32> to vector<8x128xbf16>
    %cst_27 = arith.constant dense<0.000000e+00> : vector<8x128xf32>
    %76 = tpu.matmul %75, %5, %cst_27 {dimension_numbers = #tpu.dot_dimension_numbers<[1], [0], [0], [1], [0, 0, 1, 1], [], []>} : vector<8x128xbf16>, vector<128x128xbf16>, vector<8x128xf32> -> vector<8x128xf32>
    %77 = arith.addf %76, %38 : vector<8x128xf32>
    %cst_28 = arith.constant 0.000000e+00 : f32
    %78 = vector.broadcast %cst_28 : f32 to vector<8x128xf32>
    %79 = arith.maximumf %77, %78 : vector<8x128xf32>
    %80 = arith.truncf %79 : vector<8x128xf32> to vector<8x128xbf16>
    %cst_29 = arith.constant dense<0.000000e+00> : vector<8x128xf32>
    %81 = tpu.matmul %80, %4, %cst_29 {dimension_numbers = #tpu.dot_dimension_numbers<[1], [0], [0], [1], [0, 0, 1, 1], [], []>} : vector<8x128xbf16>, vector<128x128xbf16>, vector<8x128xf32> -> vector<8x128xf32>
    %82 = vector.broadcast %11 : vector<1x128xf32> to vector<8x128xf32>
    %83 = arith.addf %81, %82 : vector<8x128xf32>
    %84 = arith.addf %0, %83 : vector<8x128xf32>
    %c0_30 = arith.constant 0 : index
    %c0_31 = arith.constant 0 : index
    %c0_32 = arith.constant 0 : index
    %85 = vector.load %arg8[%c0_30, %c0_31, %c0_32] : memref<3x8x128xf32, #tpu.memory_space<vmem>>, vector<1x8x128xf32>
    %86 = vector.shape_cast %85 : vector<1x8x128xf32> to vector<8x128xf32>
    %87 = vector.shape_cast %84 : vector<8x128xf32> to vector<1x8x128xf32>
    tpu.vector_store %arg8[%c0_30, %c0_31, %c0_32], %87 {strides = array<i32>} : memref<3x8x128xf32, #tpu.memory_space<vmem>>, vector<1x8x128xf32>,
    %88 = arith.truncf %84 : vector<8x128xf32> to vector<8x128xbf16>
    %cst_33 = arith.constant dense<0.000000e+00> : vector<8x128xf32>
    %89 = tpu.matmul %88, %5, %cst_33 {dimension_numbers = #tpu.dot_dimension_numbers<[1], [0], [0], [1], [0, 0, 1, 1], [], []>} : vector<8x128xbf16>, vector<128x128xbf16>, vector<8x128xf32> -> vector<8x128xf32>
    %90 = arith.addf %89, %56 : vector<8x128xf32>
    %cst_34 = arith.constant 0.000000e+00 : f32
    %91 = vector.broadcast %cst_34 : f32 to vector<8x128xf32>
    %92 = arith.maximumf %90, %91 : vector<8x128xf32>
    %93 = arith.truncf %92 : vector<8x128xf32> to vector<8x128xbf16>
    %cst_35 = arith.constant dense<0.000000e+00> : vector<8x128xf32>
    %94 = tpu.matmul %93, %4, %cst_35 {dimension_numbers = #tpu.dot_dimension_numbers<[1], [0], [0], [1], [0, 0, 1, 1], [], []>} : vector<8x128xbf16>, vector<128x128xbf16>, vector<8x128xf32> -> vector<8x128xf32>
    %95 = vector.broadcast %11 : vector<1x128xf32> to vector<8x128xf32>
    %96 = arith.addf %94, %95 : vector<8x128xf32>
    %97 = arith.addf %0, %96 : vector<8x128xf32>
    %c1_36 = arith.constant 1 : index
    %c0_37 = arith.constant 0 : index
    %c0_38 = arith.constant 0 : index
    %98 = vector.load %arg8[%c1_36, %c0_37, %c0_38] : memref<3x8x128xf32, #tpu.memory_space<vmem>>, vector<1x8x128xf32>
    %99 = vector.shape_cast %98 : vector<1x8x128xf32> to vector<8x128xf32>
    %100 = vector.shape_cast %97 : vector<8x128xf32> to vector<1x8x128xf32>
    tpu.vector_store %arg8[%c1_36, %c0_37, %c0_38], %100 {strides = array<i32>} : memref<3x8x128xf32, #tpu.memory_space<vmem>>, vector<1x8x128xf32>,
    %101 = arith.truncf %97 : vector<8x128xf32> to vector<8x128xbf16>
    %cst_39 = arith.constant dense<0.000000e+00> : vector<8x128xf32>
    %102 = tpu.matmul %101, %5, %cst_39 {dimension_numbers = #tpu.dot_dimension_numbers<[1], [0], [0], [1], [0, 0, 1, 1], [], []>} : vector<8x128xbf16>, vector<128x128xbf16>, vector<8x128xf32> -> vector<8x128xf32>
    %103 = arith.addf %102, %74 : vector<8x128xf32>
    %cst_40 = arith.constant 0.000000e+00 : f32
    %104 = vector.broadcast %cst_40 : f32 to vector<8x128xf32>
    %105 = arith.maximumf %103, %104 : vector<8x128xf32>
    %106 = arith.truncf %105 : vector<8x128xf32> to vector<8x128xbf16>
    %cst_41 = arith.constant dense<0.000000e+00> : vector<8x128xf32>
    %107 = tpu.matmul %106, %4, %cst_41 {dimension_numbers = #tpu.dot_dimension_numbers<[1], [0], [0], [1], [0, 0, 1, 1], [], []>} : vector<8x128xbf16>, vector<128x128xbf16>, vector<8x128xf32> -> vector<8x128xf32>
    %108 = vector.broadcast %11 : vector<1x128xf32> to vector<8x128xf32>
    %109 = arith.addf %107, %108 : vector<8x128xf32>
    %110 = arith.addf %0, %109 : vector<8x128xf32>
    %c2 = arith.constant 2 : index
    %c0_42 = arith.constant 0 : index
    %c0_43 = arith.constant 0 : index
    %111 = vector.load %arg8[%c2, %c0_42, %c0_43] : memref<3x8x128xf32, #tpu.memory_space<vmem>>, vector<1x8x128xf32>
    %112 = vector.shape_cast %111 : vector<1x8x128xf32> to vector<8x128xf32>
    %113 = vector.shape_cast %110 : vector<8x128xf32> to vector<1x8x128xf32>
    tpu.vector_store %arg8[%c2, %c0_42, %c0_43], %113 {strides = array<i32>} : memref<3x8x128xf32, #tpu.memory_space<vmem>>, vector<1x8x128xf32>,
    return
  }
  func.func @transform_0(%arg0: i32) -> (i32, i32) {
    %c0_i32 = arith.constant 0 : i32
    %c0_i32_0 = arith.constant 0 : i32
    %c0_i32_1 = arith.constant 0 : i32
    return %c0_i32, %c0_i32_0 : i32, i32
  }
  func.func @transform_1(%arg0: i32) -> (i32, i32) {
    %c0_i32 = arith.constant 0 : i32
    %c0_i32_0 = arith.constant 0 : i32
    %c0_i32_1 = arith.constant 0 : i32
    return %c0_i32, %c0_i32_0 : i32, i32
  }
  func.func @transform_2(%arg0: i32) -> (i32, i32) {
    %c0_i32 = arith.constant 0 : i32
    %c0_i32_0 = arith.constant 0 : i32
    %c0_i32_1 = arith.constant 0 : i32
    return %c0_i32, %c0_i32_0 : i32, i32
  }
  func.func @transform_3(%arg0: i32) -> (i32, i32) {
    %c0_i32 = arith.constant 0 : i32
    %c0_i32_0 = arith.constant 0 : i32
    %c0_i32_1 = arith.constant 0 : i32
    return %c0_i32, %c0_i32_0 : i32, i32
  }
  func.func @transform_4(%arg0: i32) -> (i32, i32) {
    %c0_i32 = arith.constant 0 : i32
    %c0_i32_0 = arith.constant 0 : i32
    %c0_i32_1 = arith.constant 0 : i32
    return %c0_i32, %c0_i32_0 : i32, i32
  }
  func.func @transform_5(%arg0: i32) -> (i32, i32, i32) {
    %c0_i32 = arith.constant 0 : i32
    %c0_i32_0 = arith.constant 0 : i32
    %c0_i32_1 = arith.constant 0 : i32
    %c0_i32_2 = arith.constant 0 : i32
    return %c0_i32, %c0_i32_0, %c0_i32_1 : i32, i32, i32
  }
  func.func @transform_6(%arg0: i32) -> (i32, i32) {
    %c0_i32 = arith.constant 0 : i32
    %c0_i32_0 = arith.constant 0 : i32
    %c0_i32_1 = arith.constant 0 : i32
    return %c0_i32, %c0_i32_0 : i32, i32
  }
  func.func @transform_7(%arg0: i32) -> (i32, i32, i32) {
    %c0_i32 = arith.constant 0 : i32
    %c0_i32_0 = arith.constant 0 : i32
    %c0_i32_1 = arith.constant 0 : i32
    %c0_i32_2 = arith.constant 0 : i32
    return %c0_i32, %c0_i32_0, %c0_i32_1 : i32, i32, i32
  }
}

</mosaic_0001>

<bundles_post_ra>
// kernel: _mlcag_jit.1
= control target key start
LH: loop header
LB: loop body
LE: loop exit
PB: predicated region body
PF: predicated region fallthrough
CT: control target
= control target key end

     0   :  { %12 = vsyncpa [#allocation3], 0  ;;  %s2383_s0 = inlined_call_operand.vmem [shape: f32[8,128], index: 0, kind: input, shape index: {}]   ;;  %s2384_s1 = inlined_call_operand.vmem [shape: f32[8,128], index: 1, kind: input, shape index: {}]   ;;  %s2385_s2 = inlined_call_operand.hbm [shape: bf16[128,128], index: 2, kind: input, shape index: {}]   ;;  %s2386_s3 = inlined_call_operand.hbm [shape: bf16[128,384], index: 3, kind: input, shape index: {}]   ;;  %s2387_s4 = inlined_call_operand.hbm [shape: bf16[256,128], index: 4, kind: input, shape index: {}]   ;;  %s2388_s5 = inlined_call_operand.hbm [shape: bf16[2,128,128], index: 5, kind: input, shape index: {}]   ;;  %s2389_s6 = inlined_call_operand.vmem [shape: f32[8,128], index: 6, kind: input, shape index: {}]   ;;  %s2390_s7 = inlined_call_operand.vmem [shape: f32[3,8,128], index: 7, kind: output, shape index: {}]  }
   0x1   :  { %13 = vsyncpa [#allocation5], 0 }
   0x2   :  { %14 = vsyncpa [#allocation8], 0  ;;  %s1930_s24 = smov [#allocation4]   ;;  %s1836_s28 = scalar_lea.hbm %s2386_s3, 3072 }
   0x3   :  { %s36_s25 = sshll.u32 %s1930_s24, 4  ;;  %p1837_p0 = scmp.ne.s32.totalorder %s2386_s3, %s1836_s28  ;;  %s37_s25 = int_to_ptr.vmem [resolvable:$true] %s36_s25 }
   0x4   :  { %p1840_p1 = scmp.lt.u32.totalorder %s1836_s28, %s2386_s3 }
   0x6   :  { %p1842_p2 = pnand %p1840_p1, %p1837_p0 }
   0x8   :  { %1845 = shalt.err (!%p1842_p2)
}
   0x9   :  { %s1846_s10 = scalar_lea.vmem %s37_s25, 3072  ;;  %p1851_p4 = scmp.lt.s32.totalorder %s37_s25, %s37_s25 }
   0xa   :  { %p1847_p3 = scmp.ne.s32.totalorder %s37_s25, %s1846_s10  ;;  %p1852_p5 = scmp.lt.s32.totalorder %s1846_s10, %s1846_s10 }
   0xc   :  { %p1853_p6 = por %p1852_p5, %p1851_p4 }
   0xe   :  { %p1854_p7 = pnand %p1853_p6, %p1847_p3 }
  0x10   :  { %1857 = shalt.err (!%p1854_p7)
}
  0x11   :  { %s1931_s11 = smov 192   ;;  %s1932_s12 = smov 12  }
  0x12   :  { %42 = dma.hbm_to_vmem [thread:$0]  %s2386_s3, 3072, %s37_s25, [#allocation5], %s1931_s11, %s1931_s11, %s1932_s12  }
  0x13   :  { %s1933_s15 = smov [#allocation2]   ;;  %s1858_s19 = scalar_lea.hbm %s2385_s2, 1024 }
  0x14   :  { %s24_s16 = sshll.u32 %s1933_s15, 4  ;;  %p1859_p8 = scmp.ne.s32.totalorder %s2385_s2, %s1858_s19  ;;  %s25_s16 = int_to_ptr.vmem [resolvable:$true] %s24_s16 }
  0x15   :  { %p1862_p9 = scmp.lt.u32.totalorder %s1858_s19, %s2385_s2 }
  0x17   :  { %p1864_p10 = pnand %p1862_p9, %p1859_p8 }
  0x19   :  { %1867 = shalt.err (!%p1864_p10)
}
  0x1a   :  { %s1868_s24 = scalar_lea.vmem %s25_s16, 1024  ;;  %p1873_p12 = scmp.lt.s32.totalorder %s25_s16, %s25_s16 }
  0x1b   :  { %p1869_p11 = scmp.ne.s32.totalorder %s25_s16, %s1868_s24  ;;  %p1874_p13 = scmp.lt.s32.totalorder %s1868_s24, %s1868_s24 }
  0x1d   :  { %p1875_p0 = por %p1874_p13, %p1873_p12 }
  0x1f   :  { %p1876_p1 = pnand %p1875_p0, %p1869_p11 }
  0x21   :  { %1879 = shalt.err (!%p1876_p1)
}
  0x22   :  { %s1934_s3 = smov 64   ;;  %s1935_s25 = smov 4  }
  0x23   :  { %30 = dma.hbm_to_vmem [thread:$0]  %s2385_s2, 1024, %s25_s16, [#allocation3], %s1934_s3, %s1934_s3, %s1935_s25  }
  0x24   :  { %s1936_s28 = smov [#allocation6]   ;;  %s1937_s30 = smov [#allocation7]  }
  0x25   :  { %s48_s29 = sshll.u32 %s1936_s28, 4  ;;  %s60_s8 = sshll.u32 %s1937_s30, 4  ;;  %s49_s29 = int_to_ptr.vmem [resolvable:$true] %s48_s29  ;;  %s2008_s8 = int_to_ptr.vmem [resolvable:$true] %s60_s8 }
  0x26   :  { %s1880_s11 = scalar_lea.hbm %s2387_s4, 2048 }
  0x27   :  { %p1881_p2 = scmp.ne.s32.totalorder %s2387_s4, %s1880_s11  ;;  %p1884_p3 = scmp.lt.u32.totalorder %s1880_s11, %s2387_s4 }
  0x29   :  { %p1886_p4 = pnand %p1884_p3, %p1881_p2 }
  0x2b   :  { %1889 = shalt.err (!%p1886_p4)
}
  0x2c   :  { %s1890_s2 = scalar_lea.vmem %s49_s29, 2048  ;;  %p1895_p6 = scmp.lt.s32.totalorder %s49_s29, %s49_s29 }
  0x2d   :  { %p1891_p5 = scmp.ne.s32.totalorder %s49_s29, %s1890_s2  ;;  %p1896_p7 = scmp.lt.s32.totalorder %s1890_s2, %s1890_s2 }
  0x2f   :  { %p1897_p8 = por %p1896_p7, %p1895_p6 }
  0x31   :  { %p1898_p9 = pnand %p1897_p8, %p1891_p5 }
  0x33   :  { %1901 = shalt.err (!%p1898_p9)
}
  0x34   :  { %54 = dma.hbm_to_vmem [thread:$0]  %s2387_s4, 2048, %s49_s29, [#allocation5], %s1934_s3, %s1934_s3, %s1935_s25  }
  0x35   :  { %s1902_s20 = scalar_lea.hbm %s2388_s5, 2048 }
  0x36   :  { %p1903_p10 = scmp.ne.s32.totalorder %s2388_s5, %s1902_s20  ;;  %p1906_p11 = scmp.lt.u32.totalorder %s1902_s20, %s2388_s5 }
  0x38   :  { %p1908_p12 = pnand %p1906_p11, %p1903_p10 }
  0x3a   :  { %1911 = shalt.err (!%p1908_p12)
}
  0x3b   :  { %s1912_s26 = scalar_lea.vmem %s2008_s8, 2048  ;;  %p1917_p0 = scmp.lt.s32.totalorder %s2008_s8, %s2008_s8 }
  0x3c   :  { %p1913_p13 = scmp.ne.s32.totalorder %s2008_s8, %s1912_s26  ;;  %p1918_p1 = scmp.lt.s32.totalorder %s1912_s26, %s1912_s26 }
  0x3e   :  { %p1919_p2 = por %p1918_p1, %p1917_p0 }
  0x40   :  { %p1920_p3 = pnand %p1919_p2, %p1913_p13 }
  0x42   :  { %1923 = shalt.err (!%p1920_p3)
}
  0x43   :  { %66 = dma.hbm_to_vmem [thread:$0]  %s2388_s5, 2048, %s2008_s8, [#allocation8], %s1934_s3, %s1934_s3, %s1935_s25  }
  0x44   :  { %1924 = dma.done.wait [#allocation3], 1024  }
  0x45   :  { %1925 = vsyncadd [#allocation3], 4294966272 }
  0x46   :  { %1926 = dma.done.wait [#allocation5], 5120  }
  0x47   :  { %1927 = vsyncadd [#allocation5], 4294962176 }
  0x48   :  { %1928 = dma.done.wait [#allocation8], 2048  }
  0x49   :  { %1929 = vsyncadd [#allocation8], 4294965248  ;;  %v1938_v0 = vmov 0.0   ;;  %vm1939_vm0 = vmmov 0   ;;  %v1752_v1 = vld [vmem:[#allocation2] sm:$0xff]   ;;  %v1753_v2 = vld [vmem:[#allocation2 + $0x8] sm:$0xff]   ;;  %v167_v36 = vlaneseq }
  0x4a   :  { %1446 = vmatprep.subr.bf16.mxu0 %v1938_v0  ;;  %1462 = vmatprep.mubr.msk.bf16.mxu0 %vm1939_vm0, %v1938_v0  ;;  %v1754_v3 = vld [vmem:[#allocation2 + $0x10] sm:$0xff]   ;;  %v1762_v5 = vld [vmem:[#allocation4] ss:$12 sps:$4 sm:$0xff]   ;;  %v1755_v6 = vld [vmem:[#allocation2 + $0x18] sm:$0xff]   ;;  %v1940_v35 = vmov 0  }
  0x4b   :  { %1447 = vmatpush3.bf16.msra.mxu0 %v1752_v1  ;;  %v1760_v4 = vld [vmem:[#allocation4 + $0x4] ss:$12 sps:$4 sm:$0xff]   ;;  %v1764_v7 = vld [vmem:[#allocation4 + $0x1c] ss:$12 sps:$4 sm:$0xff]   ;;  %v1768_v9 = vld [vmem:[#allocation4 + $0x34] ss:$12 sps:$4 sm:$0xff]   ;;  %452 = vmatprep.mubr.bf16.mxu1 %v1940_v35 }
  0x4c   :  { %1448 = vmatprep.subr.bf16.mxu0 %v1938_v0  ;;  %420 = vmatprep.subr.bf16.mxu1 %v1760_v4  ;;  %v1766_v8 = vld [vmem:[#allocation4 + $0x18] ss:$12 sps:$4 sm:$0xff]   ;;  %v1770_v11 = vld [vmem:[#allocation4 + $0x30] ss:$12 sps:$4 sm:$0xff]   ;;  %v1757_v13 = vld [vmem:[#allocation2 + $0x28] sm:$0xff]   ;;  %v2070_v37 = vshrl.u32 %v167_v36, 7 }
  0x4d   :  { %421 = vmatpush1.bf16.msra.mxu1 %v1762_v5  ;;  %v1756_v10 = vld [vmem:[#allocation2 + $0x20] sm:$0xff]   ;;  %v1772_v12 = vld [vmem:[#allocation4 + $0x4c] ss:$12 sps:$4 sm:$0xff]   ;;  %v1774_v14 = vld [vmem:[#allocation4 + $0x48] ss:$12 sps:$4 sm:$0xff]  }
  0x4e   :  { %422 = vmatprep.subr.bf16.mxu1 %v1764_v7  ;;  %v1776_v15 = vld [vmem:[#allocation4 + $0x64] ss:$12 sps:$4 sm:$0xff]   ;;  %v1759_v17 = vld [vmem:[#allocation2 + $0x38] sm:$0xff]   ;;  %v1778_v19 = vld [vmem:[#allocation4 + $0x60] ss:$12 sps:$4 sm:$0xff]   ;;  %v169_v38 = vsub.s32 0, %v2070_v37 }
  0x4f   :  { %1449 = vmatpush3.bf16.msra.mxu0 %v1753_v2  ;;  %v1758_v16 = vld [vmem:[#allocation2 + $0x30] sm:$0xff]   ;;  %v149_v18 = vld [vmem:[%s2384_s1] sm:$0xff]  ;;  %v1780_v20 = vld [vmem:[#allocation4 + $0x7c] ss:$12 sps:$4 sm:$0xff]   ;;  %v503_v55 = vsub.s32 4, %v2070_v37  ;;  %v701_v4 = vsub.s32 5, %v2070_v37 }
  0x50   :  { %1450 = vmatprep.subr.bf16.mxu0 %v1938_v0  ;;  %v1782_v21 = vld [vmem:[#allocation4 + $0x78] ss:$12 sps:$4 sm:$0xff]   ;;  %v1784_v22 = vld [vmem:[#allocation4 + $0x94] ss:$12 sps:$4 sm:$0xff]   ;;  %v150_v24 = vpack.c.bf16 %v149_v18, %v149_v18  ;;  %v1786_v25 = vld [vmem:[#allocation4 + $0x90] ss:$12 sps:$4 sm:$0xff]  }
  0x51   :  { %423 = vmatpush1.bf16.msra.mxu1 %v1766_v8  ;;  %v1763_v23 = vld [vmem:[#allocation4 + $0x8] ss:$12 sps:$4 sm:$0xff]   ;;  %v1767_v26 = vld [vmem:[#allocation4 + $0x20] ss:$12 sps:$4 sm:$0xff]   ;;  %v1771_v27 = vld [vmem:[#allocation4 + $0x38] ss:$12 sps:$4 sm:$0xff]  }
  0x52   :  { %424 = vmatprep.subr.bf16.mxu1 %v1768_v9  ;;  %v1775_v28 = vld [vmem:[#allocation4 + $0x50] ss:$12 sps:$4 sm:$0xff]   ;;  %v1779_v29 = vld [vmem:[#allocation4 + $0x68] ss:$12 sps:$4 sm:$0xff]   ;;  %v1783_v30 = vld [vmem:[#allocation4 + $0x80] ss:$12 sps:$4 sm:$0xff]  }
  0x53   :  { %1451 = vmatpush3.bf16.msra.mxu0 %v1754_v3  ;;  %v1787_v31 = vld [vmem:[#allocation4 + $0x98] ss:$12 sps:$4 sm:$0xff]   ;;  %v1790_v33 = vld [vmem:[#allocation4 + $0xa8] ss:$12 sps:$4 sm:$0xff]   ;;  %v1791_v34 = vld [vmem:[#allocation4 + $0xb0] ss:$12 sps:$4 sm:$0xff]  }
  0x54   :  { %1452 = vmatprep.subr.bf16.mxu0 %v1938_v0  ;;  %v1788_v32 = vld [vmem:[#allocation4 + $0xac] ss:$12 sps:$4 sm:$0xff]   ;;  %v2076_v39 = vld [vmem:[%s2389_s6] sm:$0xff]  ;;  %v1794_v49 = vld [vmem:[#allocation7 + $0x10] sm:$0xff]   ;;  %v795_v8 = vsub.s32 6, %v2070_v37 }
  0x55   :  { %425 = vmatpush1.bf16.msra.mxu1 %v1770_v11  ;;  %v170_v40 = vrot.slane %v2076_v39, %v169_v38  ;;  %v2079_v45 = vld [vmem:[#allocation7] sm:$0xff]   ;;  %v1793_v48 = vld [vmem:[#allocation7 + $0x8] sm:$0xff]   ;;  %v1795_v50 = vld [vmem:[#allocation7 + $0x18] sm:$0xff]   ;;  %v504_v56 = vrot.slane %v2076_v39, %v503_v55  ;;  %v702_v5 = vrot.slane %v2076_v39, %v701_v4 }
  0x56   :  { %426 = vmatprep.subr.bf16.mxu1 %v1772_v12  ;;  %v1796_v51 = vld [vmem:[#allocation7 + $0x20] sm:$0xff]   ;;  %v1797_v52 = vld [vmem:[#allocation7 + $0x28] sm:$0xff]   ;;  %v1798_v53 = vld [vmem:[#allocation7 + $0x30] sm:$0xff]   ;;  %v796_v9 = vrot.slane %v2076_v39, %v795_v8 }
  0x57   :  { %1453 = vmatpush3.bf16.msra.mxu0 %v1755_v6  ;;  %v1799_v54 = vld [vmem:[#allocation7 + $0x38] sm:$0xff]   ;;  %v2136_v12 = vld [vmem:[#allocation6 + $0x40] sm:$0xff]   ;;  %v2159_v18 = vld [vmem:[#allocation6 + $0x70] sm:$0xff]  }
  0x58   :  { %1454 = vmatprep.subr.bf16.mxu0 %v1938_v0  ;;  %v2192_v35 = vld [vmem:[#allocation7 + $0x68] sm:$0xff]   ;;  %v2255_v4 = vld [vmem:[#allocation6 + $0x20] sm:$0xff]  }
  0x59   :  { %427 = vmatpush1.bf16.msra.mxu1 %v1774_v14  ;;  %v2144_v14 = vld [vmem:[#allocation6 + $0x50] sm:$0xff]   ;;  %v2272_v8 = vld [vmem:[%s2383_s0] sm:$0xff] }
  0x5a   :  { %428 = vmatprep.subr.bf16.mxu1 %v1776_v15  ;;  %v2148_v15 = vld [vmem:[#allocation6 + $0x58] sm:$0xff]  }
  0x5b   :  { %1455 = vmatpush3.bf16.msra.mxu0 %v1756_v10 }
  0x5c   :  { %1456 = vmatprep.subr.bf16.mxu0 %v1938_v0 }
  0x5d   :  { %429 = vmatpush1.bf16.msra.mxu1 %v1778_v19  ;;  %v2163_v19 = vld [vmem:[#allocation6 + $0x78] sm:$0xff]  }
  0x5e   :  { %430 = vmatprep.subr.bf16.mxu1 %v1780_v20  ;;  %v509_v20 = vsub.s32 1, %v2070_v37 }
  0x5f   :  { %1457 = vmatpush3.bf16.msra.mxu0 %v1757_v13  ;;  %v2140_v13 = vld [vmem:[#allocation6 + $0x48] sm:$0xff]  }
  0x60   :  { %1458 = vmatprep.subr.bf16.mxu0 %v1938_v0 }
  0x61   :  { %431 = vmatpush1.bf16.msra.mxu1 %v1782_v21  ;;  %v2170_v21 = vrot.slane %v2076_v39, %v509_v20 }
  0x62   :  { %432 = vmatprep.subr.bf16.mxu1 %v1784_v22 }
  0x63   :  { %1459 = vmatpush3.bf16.msra.mxu0 %v1758_v16  ;;  %v2152_v16 = vld [vmem:[#allocation6 + $0x60] sm:$0xff]  }
  0x64   :  { %1460 = vmatprep.subr.bf16.mxu0 %v1938_v0 }
  0x65   :  { %433 = vmatpush1.bf16.msra.mxu1 %v1786_v25  ;;  %v2173_v25 = vld [vmem:[#allocation7 + $0x40] sm:$0xff]  }
  0x66   :  { %434 = vmatprep.subr.bf16.mxu1 %v1788_v32 }
  0x67   :  { %1461 = vmatpush3.bf16.msra.mxu0 %v1759_v17  ;;  %v2155_v17 = vld [vmem:[#allocation6 + $0x68] sm:$0xff]  }
  0x68   :  { %1466 = vmatprep.subr.bf16.mxu0 %v1938_v0 }
  0x69   :  { %435 = vmatpush1.bf16.msra.mxu1 %v1790_v33  ;;  %v2188_v33 = vld [vmem:[#allocation7 + $0x60] sm:$0xff]  }
  0x6a   :  { %1463 = vmatmul.mubr.bf16.vlgmr.msra.gmra.mrb[0].mxu0 %v150_v24  ;;  %1486 = vmatprep.subr.bf16.mxu1 %v1938_v0 }
  0x6b   :  { %1467 = vmatpush3.bf16.msra.mxu0 %v1763_v23  ;;  %1482 = vmatprep.mubr.msk.bf16.mxu0 %vm1939_vm0, %v1938_v0 }
  0x6c   :  { %1468 = vmatprep.subr.bf16.mxu0 %v1938_v0 }
  0x6f   :  { %1469 = vmatpush3.bf16.msra.mxu0 %v1767_v26 }
  0x70   :  { %1470 = vmatprep.subr.bf16.mxu0 %v1938_v0 }
  0x73   :  { %1471 = vmatpush3.bf16.msra.mxu0 %v1771_v27 }
  0x74   :  { %1472 = vmatprep.subr.bf16.mxu0 %v1938_v0 }
  0x77   :  { %1473 = vmatpush3.bf16.msra.mxu0 %v1775_v28 }
  0x78   :  { %1474 = vmatprep.subr.bf16.mxu0 %v1938_v0 }
  0x7b   :  { %1475 = vmatpush3.bf16.msra.mxu0 %v1779_v29  ;;  %v2176_v29 = vld [vmem:[#allocation7 + $0x48] sm:$0xff]  }
  0x7c   :  { %1476 = vmatprep.subr.bf16.mxu0 %v1938_v0 }
  0x7f   :  { %1477 = vmatpush3.bf16.msra.mxu0 %v1783_v30  ;;  %v2180_v30 = vld [vmem:[#allocation7 + $0x50] sm:$0xff]  }
  0x80   :  { %1478 = vmatprep.subr.bf16.mxu0 %v1938_v0 }
  0x83   :  { %1479 = vmatpush3.bf16.msra.mxu0 %v1787_v31  ;;  %v2184_v31 = vld [vmem:[#allocation7 + $0x58] sm:$0xff]  }
  0x84   :  { %1480 = vmatprep.subr.bf16.mxu0 %v1938_v0 }
  0x87   :  { %1481 = vmatpush3.bf16.msra.mxu0 %v1791_v34 }
  0x88   :  { %1506 = vmatprep.subr.bf16.mxu0 %v1938_v0 }
 0x13d   :  { %v253_v41 = vpop.f32.mrb[0].mxu0 }
 0x13e   :  { %v254_v42 = vadd.f32 %v253_v41, %v170_v40  ;;  %v1464_v43 = vpop.f32.mrb[1].mxu0 }
 0x13f   :  { %v256_v44 = vpop.f32.mrb[2].mxu0 }
 0x140   :  { %v259_v46 = vpack.c.bf16 %v254_v42, %v254_v42  ;;  %v1465_v47 = vpop.f32.mrb[3].mxu0 }
 0x142   :  { %453 = vmatmul.mubr.bf16.vlgmr.msra.gmra.mrb[0].mxu1 %v259_v46  ;;  %1483 = vmatmul.mubr.bf16.vlgmr.msra.gmra.mrb[4].mxu0 %v259_v46 }
 0x143   :  { %1487 = vmatpush3.bf16.msra.mxu1 %v2079_v45  ;;  %1502 = vmatprep.mubr.msk.bf16.mxu1 %vm1939_vm0, %v1938_v0 }
 0x144   :  { %1488 = vmatprep.subr.bf16.mxu1 %v1938_v0  ;;  %1522 = vmatprep.mubr.msk.bf16.mxu0 %vm1939_vm0, %v1938_v0 }
 0x145   :  { %1507 = vmatpush3.bf16.msra.mxu0 %v2136_v12 }
 0x146   :  { %1508 = vmatprep.subr.bf16.mxu0 %v1938_v0 }
 0x147   :  { %1489 = vmatpush3.bf16.msra.mxu1 %v1793_v48 }
 0x148   :  { %1490 = vmatprep.subr.bf16.mxu1 %v1938_v0 }
 0x149   :  { %1509 = vmatpush3.bf16.msra.mxu0 %v2140_v13 }
 0x14a   :  { %1510 = vmatprep.subr.bf16.mxu0 %v1938_v0 }
 0x14b   :  { %1491 = vmatpush3.bf16.msra.mxu1 %v1794_v49 }
 0x14c   :  { %1492 = vmatprep.subr.bf16.mxu1 %v1938_v0 }
 0x14d   :  { %1511 = vmatpush3.bf16.msra.mxu0 %v2144_v14 }
 0x14e   :  { %1512 = vmatprep.subr.bf16.mxu0 %v1938_v0 }
 0x14f   :  { %1493 = vmatpush3.bf16.msra.mxu1 %v1795_v50 }
 0x150   :  { %1494 = vmatprep.subr.bf16.mxu1 %v1938_v0 }
 0x151   :  { %1513 = vmatpush3.bf16.msra.mxu0 %v2148_v15 }
 0x152   :  { %1514 = vmatprep.subr.bf16.mxu0 %v1938_v0 }
 0x153   :  { %1495 = vmatpush3.bf16.msra.mxu1 %v1796_v51 }
 0x154   :  { %1496 = vmatprep.subr.bf16.mxu1 %v1938_v0 }
 0x155   :  { %1515 = vmatpush3.bf16.msra.mxu0 %v2152_v16 }
 0x156   :  { %1516 = vmatprep.subr.bf16.mxu0 %v1938_v0 }
 0x157   :  { %1497 = vmatpush3.bf16.msra.mxu1 %v1797_v52 }
 0x158   :  { %1498 = vmatprep.subr.bf16.mxu1 %v1938_v0 }
 0x159   :  { %1517 = vmatpush3.bf16.msra.mxu0 %v2155_v17 }
 0x15a   :  { %1518 = vmatprep.subr.bf16.mxu0 %v1938_v0 }
 0x15b   :  { %1499 = vmatpush3.bf16.msra.mxu1 %v1798_v53 }
 0x15c   :  { %1500 = vmatprep.subr.bf16.mxu1 %v1938_v0 }
 0x15d   :  { %1519 = vmatpush3.bf16.msra.mxu0 %v2159_v18 }
 0x15e   :  { %1520 = vmatprep.subr.bf16.mxu0 %v1938_v0 }
 0x15f   :  { %1501 = vmatpush3.bf16.msra.mxu1 %v1799_v54 }
 0x160   :  { %1526 = vmatprep.subr.bf16.mxu1 %v1938_v0 }
 0x161   :  { %1521 = vmatpush3.bf16.msra.mxu0 %v2163_v19 }
 0x162   :  { %1546 = vmatprep.subr.bf16.mxu0 %v1938_v0 }
 0x215   :  { %v454_v57 = vpop.f32.mrb[0].mxu1  ;;  %v495_v58 = vpop.f32.mrb[4].mxu0 }
 0x216   :  { %v2096_v59 = vadd.f32 %v504_v56, %v454_v57  ;;  %v456_v60 = vpop.f32.mrb[1].mxu1  ;;  %v1484_v61 = vpop.f32.mrb[5].mxu0  ;;  %v2128_v10 = vadd.f32 %v796_v9, %v495_v58  ;;  %v887_v9 = vpack.c.bf16 %v2272_v8, %v2272_v8 }
 0x217   :  { %v458_v62 = vpop.f32.mrb[2].mxu1  ;;  %v498_v63 = vpop.f32.mrb[6].mxu0  ;;  %v2111_v6 = vadd.f32 %v702_v5, %v456_v60  ;;  %v2259_v5 = vld [vmem:[#allocation6 + $0x28] sm:$0xff]  }
 0x218   :  { %v506_v1 = vpack.c.bf16 %v2096_v59, %v2096_v59  ;;  %v459_v2 = vpop.f32.mrb[3].mxu1  ;;  %v1485_v3 = vpop.f32.mrb[7].mxu0  ;;  %v798_v11 = vpack.c.bf16 %v2128_v10, %v2128_v10  ;;  %v2237_v62 = vld [vmem:[#allocation6] sm:$0xff]  }
 0x219   :  { %v704_v7 = vpack.c.bf16 %v2111_v6, %v2111_v6  ;;  %v2247_v2 = vld [vmem:[#allocation6 + $0x10] sm:$0xff]   ;;  %v2251_v3 = vld [vmem:[#allocation6 + $0x18] sm:$0xff]  }
 0x21a   :  { %1503 = vmatmul.mubr.bf16.vlgmr.msra.gmra.mrb[4].mxu1 %v506_v1  ;;  %v2241_v1 = vld [vmem:[#allocation6 + $0x8] sm:$0xff]  }
 0x21b   :  { %1527 = vmatpush3.bf16.msra.mxu1 %v2079_v45  ;;  %1542 = vmatprep.mubr.msk.bf16.mxu1 %vm1939_vm0, %v1938_v0 }
 0x21c   :  { %1528 = vmatprep.subr.bf16.mxu1 %v1938_v0 }
 0x21f   :  { %1529 = vmatpush3.bf16.msra.mxu1 %v1793_v48 }
 0x220   :  { %1530 = vmatprep.subr.bf16.mxu1 %v1938_v0 }
 0x223   :  { %1531 = vmatpush3.bf16.msra.mxu1 %v1794_v49 }
 0x224   :  { %1532 = vmatprep.subr.bf16.mxu1 %v1938_v0 }
 0x227   :  { %1533 = vmatpush3.bf16.msra.mxu1 %v1795_v50 }
 0x228   :  { %1534 = vmatprep.subr.bf16.mxu1 %v1938_v0 }
 0x22b   :  { %1535 = vmatpush3.bf16.msra.mxu1 %v1796_v51 }
 0x22c   :  { %1536 = vmatprep.subr.bf16.mxu1 %v1938_v0 }
 0x22f   :  { %1537 = vmatpush3.bf16.msra.mxu1 %v1797_v52 }
 0x230   :  { %1538 = vmatprep.subr.bf16.mxu1 %v1938_v0 }
 0x233   :  { %1539 = vmatpush3.bf16.msra.mxu1 %v1798_v53 }
 0x234   :  { %1540 = vmatprep.subr.bf16.mxu1 %v1938_v0 }
 0x237   :  { %1541 = vmatpush3.bf16.msra.mxu1 %v1799_v54 }
 0x238   :  { %1566 = vmatprep.subr.bf16.mxu1 %v1938_v0 }
 0x23a   :  { %1543 = vmatmul.mubr.bf16.vlgmr.msra.gmra.mrb[8].mxu1 %v704_v7  ;;  %v2267_v7 = vld [vmem:[#allocation6 + $0x38] sm:$0xff]  }
 0x23b   :  { %1567 = vmatpush3.bf16.msra.mxu1 %v2079_v45  ;;  %1582 = vmatprep.mubr.msk.bf16.mxu1 %vm1939_vm0, %v1938_v0 }
 0x23c   :  { %1568 = vmatprep.subr.bf16.mxu1 %v1938_v0 }
 0x23f   :  { %1569 = vmatpush3.bf16.msra.mxu1 %v1793_v48 }
 0x240   :  { %1570 = vmatprep.subr.bf16.mxu1 %v1938_v0 }
 0x243   :  { %1571 = vmatpush3.bf16.msra.mxu1 %v1794_v49 }
 0x244   :  { %1572 = vmatprep.subr.bf16.mxu1 %v1938_v0 }
 0x247   :  { %1573 = vmatpush3.bf16.msra.mxu1 %v1795_v50 }
 0x248   :  { %1574 = vmatprep.subr.bf16.mxu1 %v1938_v0 }
 0x24b   :  { %1575 = vmatpush3.bf16.msra.mxu1 %v1796_v51 }
 0x24c   :  { %1576 = vmatprep.subr.bf16.mxu1 %v1938_v0 }
 0x24f   :  { %1577 = vmatpush3.bf16.msra.mxu1 %v1797_v52 }
 0x250   :  { %1578 = vmatprep.subr.bf16.mxu1 %v1938_v0 }
 0x253   :  { %1579 = vmatpush3.bf16.msra.mxu1 %v1798_v53 }
 0x254   :  { %1580 = vmatprep.subr.bf16.mxu1 %v1938_v0 }
 0x257   :  { %1581 = vmatpush3.bf16.msra.mxu1 %v1799_v54 }
 0x258   :  { %1626 = vmatprep.subr.bf16.mxu1 %v1938_v0 }
 0x25a   :  { %1583 = vmatmul.mubr.bf16.vlgmr.msra.gmra.mrb[12].mxu1 %v798_v11  ;;  %v2301_v11 = vld [vmem:[#allocation7 + $0x78] sm:$0xff]  }
 0x25b   :  { %1642 = vmatprep.mubr.msk.bf16.mxu1 %vm1939_vm0, %v1938_v0  ;;  %1627 = vmatpush3.bf16.msra.mxu1 %v2173_v25 }
 0x25c   :  { %1628 = vmatprep.subr.bf16.mxu1 %v1938_v0 }
 0x25f   :  { %1629 = vmatpush3.bf16.msra.mxu1 %v2176_v29 }
 0x260   :  { %1630 = vmatprep.subr.bf16.mxu1 %v1938_v0 }
 0x263   :  { %1631 = vmatpush3.bf16.msra.mxu1 %v2180_v30 }
 0x264   :  { %1632 = vmatprep.subr.bf16.mxu1 %v1938_v0 }
 0x267   :  { %1633 = vmatpush3.bf16.msra.mxu1 %v2184_v31 }
 0x268   :  { %1634 = vmatprep.subr.bf16.mxu1 %v1938_v0 }
 0x26b   :  { %1635 = vmatpush3.bf16.msra.mxu1 %v2188_v33 }
 0x26c   :  { %1636 = vmatprep.subr.bf16.mxu1 %v1938_v0 }
 0x26f   :  { %1637 = vmatpush3.bf16.msra.mxu1 %v2192_v35 }
 0x270   :  { %1638 = vmatprep.subr.bf16.mxu1 %v1938_v0 }
 0x2ed   :  { %v593_v22 = vpop.f32.mrb[4].mxu1 }
 0x2ee   :  { %v594_v23 = vadd.f32 %v593_v22, %v2170_v21  ;;  %v1504_v24 = vpop.f32.mrb[5].mxu1 }
 0x2ef   :  { %v596_v26 = vpop.f32.mrb[6].mxu1 }
 0x2f0   :  { %v1291_v27 = vmul.f32 -1.442695, %v594_v23  ;;  %v1505_v28 = vpop.f32.mrb[7].mxu1 }
 0x2f2   :  { %1824 = vpow2.f32 %v1291_v27 }
 0x2fc   :  { %v1825_v32 = vpop.eup %1824 }
 0x2fd   :  { %v602_v34 = vadd.f32 1.0, %v1825_v32 }
 0x2ff   :  { %1826 = vrcp.f32 %v602_v34 }
 0x309   :  { %v1827_v36 = vpop.eup %1826 }
 0x30a   :  { %v605_v38 = vmul.f32 %v1827_v36, %v2096_v59 }
 0x30c   :  { %v606_v40 = vpack.c.bf16 %v605_v38, %v605_v38 }
 0x30d   :  { %v739_v41 = vpop.f32.mrb[8].mxu1 }
 0x30e   :  { %v740_v42 = vadd.f32 %v739_v41, %v2170_v21  ;;  %v1544_v43 = vpop.f32.mrb[9].mxu1  ;;  %1523 = vmatmul.mubr.bf16.vlgmr.msra.gmra.mrb[8].mxu0 %v606_v40 }
 0x30f   :  { %v742_v44 = vpop.f32.mrb[10].mxu1  ;;  %1547 = vmatpush3.bf16.msra.mxu0 %v2136_v12  ;;  %1562 = vmatprep.mubr.msk.bf16.mxu0 %vm1939_vm0, %v1938_v0 }
 0x310   :  { %v1300_v45 = vmul.f32 -1.442695, %v740_v42  ;;  %v1545_v46 = vpop.f32.mrb[11].mxu1  ;;  %1548 = vmatprep.subr.bf16.mxu0 %v1938_v0 }
 0x312   :  { %1828 = vpow2.f32 %v1300_v45 }
 0x313   :  { %1549 = vmatpush3.bf16.msra.mxu0 %v2140_v13 }
 0x314   :  { %1550 = vmatprep.subr.bf16.mxu0 %v1938_v0 }
 0x317   :  { %1551 = vmatpush3.bf16.msra.mxu0 %v2144_v14 }
 0x318   :  { %1552 = vmatprep.subr.bf16.mxu0 %v1938_v0 }
 0x31b   :  { %1553 = vmatpush3.bf16.msra.mxu0 %v2148_v15 }
 0x31c   :  { %v1829_v47 = vpop.eup %1828  ;;  %1554 = vmatprep.subr.bf16.mxu0 %v1938_v0 }
 0x31d   :  { %v748_v48 = vadd.f32 1.0, %v1829_v47 }
 0x31f   :  { %1830 = vrcp.f32 %v748_v48  ;;  %1555 = vmatpush3.bf16.msra.mxu0 %v2152_v16 }
 0x320   :  { %1556 = vmatprep.subr.bf16.mxu0 %v1938_v0 }
 0x323   :  { %1557 = vmatpush3.bf16.msra.mxu0 %v2155_v17 }
 0x324   :  { %1558 = vmatprep.subr.bf16.mxu0 %v1938_v0 }
 0x327   :  { %1559 = vmatpush3.bf16.msra.mxu0 %v2159_v18 }
 0x328   :  { %1560 = vmatprep.subr.bf16.mxu0 %v1938_v0 }
 0x329   :  { %v1831_v49 = vpop.eup %1830 }
 0x32a   :  { %v751_v50 = vmul.f32 %v1831_v49, %v2111_v6  ;;  %v2263_v6 = vld [vmem:[#allocation6 + $0x30] sm:$0xff]  }
 0x32b   :  { %1561 = vmatpush3.bf16.msra.mxu0 %v2163_v19 }
 0x32c   :  { %v752_v51 = vpack.c.bf16 %v751_v50, %v751_v50  ;;  %1586 = vmatprep.subr.bf16.mxu0 %v1938_v0 }
 0x32d   :  { %v833_v52 = vpop.f32.mrb[12].mxu1 }
 0x32e   :  { %v834_v53 = vadd.f32 %v833_v52, %v2170_v21  ;;  %1563 = vmatmul.mubr.bf16.vlgmr.msra.gmra.mrb[12].mxu0 %v752_v51  ;;  %v1584_v54 = vpop.f32.mrb[13].mxu1  ;;  %v980_v21 = vsub.s32 3, %v2070_v37 }
 0x32f   :  { %v836_v55 = vpop.f32.mrb[14].mxu1  ;;  %1587 = vmatpush3.bf16.msra.mxu0 %v2136_v12  ;;  %1602 = vmatprep.mubr.msk.bf16.mxu0 %vm1939_vm0, %v1938_v0  ;;  %v609_v12 = vsub.s32 2, %v2070_v37 }
 0x330   :  { %v1301_v56 = vmul.f32 -1.442695, %v834_v53  ;;  %v1585_v57 = vpop.f32.mrb[15].mxu1  ;;  %1588 = vmatprep.subr.bf16.mxu0 %v1938_v0  ;;  %v2330_v22 = vrot.slane %v2076_v39, %v980_v21 }
 0x332   :  { %1832 = vpow2.f32 %v1301_v56 }
 0x333   :  { %1589 = vmatpush3.bf16.msra.mxu0 %v2140_v13  ;;  %v2307_v13 = vrot.slane %v2076_v39, %v609_v12 }
 0x334   :  { %1590 = vmatprep.subr.bf16.mxu0 %v1938_v0 }
 0x337   :  { %1591 = vmatpush3.bf16.msra.mxu0 %v2144_v14 }
 0x338   :  { %1592 = vmatprep.subr.bf16.mxu0 %v1938_v0 }
 0x33b   :  { %1593 = vmatpush3.bf16.msra.mxu0 %v2148_v15 }
 0x33c   :  { %v1833_v58 = vpop.eup %1832  ;;  %1594 = vmatprep.subr.bf16.mxu0 %v1938_v0 }
 0x33d   :  { %v842_v59 = vadd.f32 1.0, %v1833_v58 }
 0x33f   :  { %1834 = vrcp.f32 %v842_v59  ;;  %1595 = vmatpush3.bf16.msra.mxu0 %v2152_v16 }
 0x340   :  { %1596 = vmatprep.subr.bf16.mxu0 %v1938_v0 }
 0x343   :  { %1597 = vmatpush3.bf16.msra.mxu0 %v2155_v17 }
 0x344   :  { %1598 = vmatprep.subr.bf16.mxu0 %v1938_v0 }
 0x347   :  { %1599 = vmatpush3.bf16.msra.mxu0 %v2159_v18 }
 0x348   :  { %1600 = vmatprep.subr.bf16.mxu0 %v1938_v0 }
 0x349   :  { %v1835_v60 = vpop.eup %1834 }
 0x34a   :  { %v845_v61 = vmul.f32 %v1835_v60, %v2128_v10  ;;  %v2297_v10 = vld [vmem:[#allocation7 + $0x70] sm:$0xff]  }
 0x34b   :  { %1601 = vmatpush3.bf16.msra.mxu0 %v2163_v19  ;;  %1639 = vmatpush3.bf16.msra.mxu1 %v2297_v10 }
 0x34c   :  { %v846_v63 = vpack.c.bf16 %v845_v61, %v845_v61  ;;  %1606 = vmatprep.subr.bf16.mxu0 %v1938_v0  ;;  %1640 = vmatprep.subr.bf16.mxu1 %v1938_v0 }
 0x34e   :  { %1603 = vmatmul.mubr.bf16.vlgmr.msra.gmra.mrb[16].mxu0 %v846_v63 }
 0x34f   :  { %1607 = vmatpush3.bf16.msra.mxu0 %v2237_v62  ;;  %1622 = vmatprep.mubr.msk.bf16.mxu0 %vm1939_vm0, %v1938_v0 }
 0x350   :  { %1608 = vmatprep.subr.bf16.mxu0 %v1938_v0  ;;  %1641 = vmatpush3.bf16.msra.mxu1 %v2301_v11 }
 0x351   :  { %1666 = vmatprep.subr.bf16.mxu1 %v1938_v0 }
 0x353   :  { %1609 = vmatpush3.bf16.msra.mxu0 %v2241_v1 }
 0x354   :  { %1610 = vmatprep.subr.bf16.mxu0 %v1938_v0 }
 0x357   :  { %1611 = vmatpush3.bf16.msra.mxu0 %v2247_v2 }
 0x358   :  { %1612 = vmatprep.subr.bf16.mxu0 %v1938_v0 }
 0x35b   :  { %1613 = vmatpush3.bf16.msra.mxu0 %v2251_v3 }
 0x35c   :  { %1614 = vmatprep.subr.bf16.mxu0 %v1938_v0 }
 0x35f   :  { %1615 = vmatpush3.bf16.msra.mxu0 %v2255_v4 }
 0x360   :  { %1616 = vmatprep.subr.bf16.mxu0 %v1938_v0 }
 0x363   :  { %1617 = vmatpush3.bf16.msra.mxu0 %v2259_v5 }
 0x364   :  { %1618 = vmatprep.subr.bf16.mxu0 %v1938_v0 }
 0x367   :  { %1619 = vmatpush3.bf16.msra.mxu0 %v2263_v6 }
 0x368   :  { %1620 = vmatprep.subr.bf16.mxu0 %v1938_v0 }
 0x36b   :  { %1621 = vmatpush3.bf16.msra.mxu0 %v2267_v7 }
 0x36c   :  { %1646 = vmatprep.subr.bf16.mxu0 %v1938_v0 }
 0x36e   :  { %1623 = vmatmul.mubr.bf16.vlgmr.msra.gmra.mrb[8].mxu0 %v887_v9 }
 0x36f   :  { %1647 = vmatpush3.bf16.msra.mxu0 %v2237_v62  ;;  %1662 = vmatprep.mubr.msk.bf16.mxu0 %vm1939_vm0, %v1938_v0 }
 0x370   :  { %1648 = vmatprep.subr.bf16.mxu0 %v1938_v0 }
 0x373   :  { %1649 = vmatpush3.bf16.msra.mxu0 %v2241_v1 }
 0x374   :  { %1650 = vmatprep.subr.bf16.mxu0 %v1938_v0 }
 0x377   :  { %1651 = vmatpush3.bf16.msra.mxu0 %v2247_v2 }
 0x378   :  { %1652 = vmatprep.subr.bf16.mxu0 %v1938_v0 }
 0x37b   :  { %1653 = vmatpush3.bf16.msra.mxu0 %v2251_v3 }
 0x37c   :  { %1654 = vmatprep.subr.bf16.mxu0 %v1938_v0 }
 0x37f   :  { %1655 = vmatpush3.bf16.msra.mxu0 %v2255_v4 }
 0x380   :  { %1656 = vmatprep.subr.bf16.mxu0 %v1938_v0 }
 0x383   :  { %1657 = vmatpush3.bf16.msra.mxu0 %v2259_v5 }
 0x384   :  { %1658 = vmatprep.subr.bf16.mxu0 %v1938_v0 }
 0x387   :  { %1659 = vmatpush3.bf16.msra.mxu0 %v2263_v6 }
 0x388   :  { %1660 = vmatprep.subr.bf16.mxu0 %v1938_v0 }
 0x38b   :  { %1661 = vmatpush3.bf16.msra.mxu0 %v2267_v7 }
 0x38c   :  { %1686 = vmatprep.subr.bf16.mxu0 %v1938_v0 }
 0x441   :  { %v970_v14 = vpop.f32.mrb[8].mxu0 }
 0x442   :  { %v1726_v15 = vadd.f32 %v970_v14, %v2307_v13  ;;  %v1624_v16 = vpop.f32.mrb[9].mxu0 }
 0x443   :  { %v973_v17 = vpop.f32.mrb[10].mxu0 }
 0x444   :  { %v976_v18 = vmax.f32 %v1726_v15, 0.0  ;;  %v1625_v19 = vpop.f32.mrb[11].mxu0 }
 0x446   :  { %v977_v20 = vpack.c.bf16 %v976_v18, %v976_v18 }
 0x448   :  { %1643 = vmatmul.mubr.bf16.vlgmr.msra.gmra.mrb[16].mxu1 %v977_v20 }
 0x449   :  { %1667 = vmatpush3.bf16.msra.mxu1 %v2173_v25  ;;  %1682 = vmatprep.mubr.msk.bf16.mxu1 %vm1939_vm0, %v1938_v0 }
 0x44a   :  { %1668 = vmatprep.subr.bf16.mxu1 %v1938_v0 }
 0x44d   :  { %1669 = vmatpush3.bf16.msra.mxu1 %v2176_v29 }
 0x44e   :  { %1670 = vmatprep.subr.bf16.mxu1 %v1938_v0 }
 0x451   :  { %1671 = vmatpush3.bf16.msra.mxu1 %v2180_v30 }
 0x452   :  { %1672 = vmatprep.subr.bf16.mxu1 %v1938_v0 }
 0x455   :  { %1673 = vmatpush3.bf16.msra.mxu1 %v2184_v31 }
 0x456   :  { %1674 = vmatprep.subr.bf16.mxu1 %v1938_v0 }
 0x459   :  { %1675 = vmatpush3.bf16.msra.mxu1 %v2188_v33 }
 0x45a   :  { %1676 = vmatprep.subr.bf16.mxu1 %v1938_v0 }
 0x45d   :  { %1677 = vmatpush3.bf16.msra.mxu1 %v2192_v35 }
 0x45e   :  { %1678 = vmatprep.subr.bf16.mxu1 %v1938_v0 }
 0x461   :  { %1679 = vmatpush3.bf16.msra.mxu1 %v2297_v10 }
 0x462   :  { %1680 = vmatprep.subr.bf16.mxu1 %v1938_v0 }
 0x465   :  { %1681 = vmatpush3.bf16.msra.mxu1 %v2301_v11 }
 0x466   :  { %1706 = vmatprep.subr.bf16.mxu1 %v1938_v0 }
 0x51b   :  { %v1064_v23 = vpop.f32.mrb[16].mxu1 }
 0x51c   :  { %v1065_v24 = vadd.f32 %v1064_v23, %v2330_v22  ;;  %v1644_v26 = vpop.f32.mrb[17].mxu1 }
 0x51d   :  { %v1067_v27 = vpop.f32.mrb[18].mxu1 }
 0x51e   :  { %v1070_v28 = vadd.f32 %v1065_v24, %v2272_v8  ;;  %v1645_v32 = vpop.f32.mrb[19].mxu1 }
 0x520   :  { %1071 = vst [vmem:[%s2390_s7] sm:$0xff] %v1070_v28  ;;  %v1072_v34 = vpack.c.bf16 %v1070_v28, %v1070_v28 }
 0x522   :  { %1663 = vmatmul.mubr.bf16.vlgmr.msra.gmra.mrb[12].mxu0 %v1072_v34 }
 0x523   :  { %1687 = vmatpush3.bf16.msra.mxu0 %v2237_v62  ;;  %1702 = vmatprep.mubr.msk.bf16.mxu0 %vm1939_vm0, %v1938_v0 }
 0x524   :  { %1688 = vmatprep.subr.bf16.mxu0 %v1938_v0 }
 0x527   :  { %1689 = vmatpush3.bf16.msra.mxu0 %v2241_v1 }
 0x528   :  { %1690 = vmatprep.subr.bf16.mxu0 %v1938_v0 }
 0x52b   :  { %1691 = vmatpush3.bf16.msra.mxu0 %v2247_v2 }
 0x52c   :  { %1692 = vmatprep.subr.bf16.mxu0 %v1938_v0 }
 0x52f   :  { %1693 = vmatpush3.bf16.msra.mxu0 %v2251_v3 }
 0x530   :  { %1694 = vmatprep.subr.bf16.mxu0 %v1938_v0 }
 0x533   :  { %1695 = vmatpush3.bf16.msra.mxu0 %v2255_v4 }
 0x534   :  { %1696 = vmatprep.subr.bf16.mxu0 %v1938_v0 }
 0x537   :  { %1697 = vmatpush3.bf16.msra.mxu0 %v2259_v5 }
 0x538   :  { %1698 = vmatprep.subr.bf16.mxu0 %v1938_v0 }
 0x53b   :  { %1699 = vmatpush3.bf16.msra.mxu0 %v2263_v6 }
 0x53c   :  { %1700 = vmatprep.subr.bf16.mxu0 %v1938_v0 }
 0x53f   :  { %1701 = vmatpush3.bf16.msra.mxu0 %v2267_v7 }
 0x5f5   :  { %v1107_v37 = vpop.f32.mrb[12].mxu0 }
 0x5f6   :  { %v1727_v39 = vadd.f32 %v1107_v37, %v2307_v13  ;;  %v1664_v36 = vpop.f32.mrb[13].mxu0 }
 0x5f7   :  { %v1110_v38 = vpop.f32.mrb[14].mxu0 }
 0x5f8   :  { %v1113_v40 = vmax.f32 %v1727_v39, 0.0  ;;  %v1665_v41 = vpop.f32.mrb[15].mxu0 }
 0x5fa   :  { %v1114_v42 = vpack.c.bf16 %v1113_v40, %v1113_v40 }
 0x5fc   :  { %1683 = vmatmul.mubr.bf16.vlgmr.msra.gmra.mrb[20].mxu1 %v1114_v42 }
 0x5fd   :  { %1707 = vmatpush3.bf16.msra.mxu1 %v2173_v25  ;;  %1722 = vmatprep.mubr.msk.bf16.mxu1 %vm1939_vm0, %v1938_v0 }
 0x5fe   :  { %1708 = vmatprep.subr.bf16.mxu1 %v1938_v0 }
 0x601   :  { %1709 = vmatpush3.bf16.msra.mxu1 %v2176_v29 }
 0x602   :  { %1710 = vmatprep.subr.bf16.mxu1 %v1938_v0 }
 0x605   :  { %1711 = vmatpush3.bf16.msra.mxu1 %v2180_v30 }
 0x606   :  { %1712 = vmatprep.subr.bf16.mxu1 %v1938_v0 }
 0x609   :  { %1713 = vmatpush3.bf16.msra.mxu1 %v2184_v31 }
 0x60a   :  { %1714 = vmatprep.subr.bf16.mxu1 %v1938_v0 }
 0x60d   :  { %1715 = vmatpush3.bf16.msra.mxu1 %v2188_v33 }
 0x60e   :  { %1716 = vmatprep.subr.bf16.mxu1 %v1938_v0 }
 0x611   :  { %1717 = vmatpush3.bf16.msra.mxu1 %v2192_v35 }
 0x612   :  { %1718 = vmatprep.subr.bf16.mxu1 %v1938_v0 }
 0x615   :  { %1719 = vmatpush3.bf16.msra.mxu1 %v2297_v10 }
 0x616   :  { %1720 = vmatprep.subr.bf16.mxu1 %v1938_v0 }
 0x619   :  { %1721 = vmatpush3.bf16.msra.mxu1 %v2301_v11 }
 0x6cf   :  { %v1149_v25 = vpop.f32.mrb[20].mxu1 }
 0x6d0   :  { %v1150_v29 = vadd.f32 %v1149_v25, %v2330_v22  ;;  %v1684_v30 = vpop.f32.mrb[21].mxu1 }
 0x6d1   :  { %v1152_v31 = vpop.f32.mrb[22].mxu1 }
 0x6d2   :  { %v1155_v43 = vadd.f32 %v1150_v29, %v2272_v8  ;;  %v1685_v33 = vpop.f32.mrb[23].mxu1 }
 0x6d4   :  { %1318 = vst [vmem:[%s2390_s7 + $0x8] sm:$0xff] %v1155_v43  ;;  %v1158_v35 = vpack.c.bf16 %v1155_v43, %v1155_v43 }
 0x6d6   :  { %1703 = vmatmul.mubr.bf16.vlgmr.msra.gmra.mrb[16].mxu0 %v1158_v35 }
 0x7a9   :  { %v1193_v44 = vpop.f32.mrb[16].mxu0 }
 0x7aa   :  { %v1728_v45 = vadd.f32 %v1193_v44, %v2307_v13  ;;  %v1704_v0 = vpop.f32.mrb[17].mxu0 }
 0x7ab   :  { %v1196_v46 = vpop.f32.mrb[18].mxu0 }
 0x7ac   :  { %v1199_v47 = vmax.f32 %v1728_v45, 0.0  ;;  %v1705_v48 = vpop.f32.mrb[19].mxu0 }
 0x7ae   :  { %v1200_v49 = vpack.c.bf16 %v1199_v47, %v1199_v47 }
 0x7b0   :  { %1723 = vmatmul.mubr.bf16.vlgmr.msra.gmra.mrb[24].mxu1 %v1200_v49 }
 0x883   :  { %v1235_v50 = vpop.f32.mrb[24].mxu1 }
 0x884   :  { %v1236_v51 = vadd.f32 %v1235_v50, %v2330_v22  ;;  %v1724_v52 = vpop.f32.mrb[25].mxu1 }
 0x885   :  { %v1238_v53 = vpop.f32.mrb[26].mxu1 }
 0x886   :  { %v1241_v54 = vadd.f32 %v1236_v51, %v2272_v8  ;;  %v1725_v55 = vpop.f32.mrb[27].mxu1 }
 0x888   :  { %1319 = vst [vmem:[%s2390_s7 + $0x10] sm:$0xff] %v1241_v54 }
 0x889   :  { %1248 = vsyncpa [#allocation3], 1 }
 0x88a   :  { %1249 = vsyncpa [#allocation5], 1 }
 0x88b   :  { %1250 = vsyncpa [#allocation8], 1 }

</bundles_post_ra>
